<compile_context>
chip_gen: v7x
topology: tpu7x:2x2x1
jax: 0.10.0
libtpu: 0.0.40
codegen_flags: <defaults>
</compile_context>

<pallas_src>
import functools
import math

import jax
import jax.numpy as jnp
from jax import lax
from jax.experimental import pallas as pl
from jax.experimental.pallas import tpu as pltpu


def _entropic_sum_kernel(x_ref, o_ref, *, a, inv_n, tile_rows, kt, n_rows,
                         needs_mask):
    """Accumulate sum(exp(-a*x)) over the row (reduction) axis into o_ref."""
    c = pl.program_id(0)          # reduction-split (core) axis
    k = pl.program_id(2)          # reduction tile index within this split

    @pl.when(k == 0)
    def _init():
        o_ref[...] = jnp.zeros_like(o_ref)

    def accumulate(u):
        o_ref[...] += jnp.sum(u, axis=0)[None, None, :]

    def exp_tile():
        # Upcast happens in VMEM only; exp goes to the EUP slot.
        return jnp.exp(x_ref[...].astype(jnp.float32) * (-a))

    if not needs_mask:
        # Statically known: every tile is full -> no masking anywhere.
        accumulate(exp_tile())
    else:
        valid = n_rows - (c * kt + k) * tile_rows   # in-range rows of this tile

        @pl.when(valid >= tile_rows)                # fast path: full tile
        def _full():
            accumulate(exp_tile())

        @pl.when(jnp.logical_and(valid > 0, valid < tile_rows))  # ragged tile
        def _ragged():
            u = exp_tile()
            row = lax.broadcasted_iota(jnp.int32, u.shape, 0)
            # Keep this a select (not multiply-by-mask): exp(garbage) may be
            # Inf and 0*Inf would poison the accumulator.
            accumulate(jnp.where(row < valid, u, 0.0))

        # valid <= 0: clamped dead step -- no compute (and no new DMA, since
        # the clamped index_map repeats the previous block index).

    @pl.when(k == kt - 1)
    def _finalize():                                # scale once, not per step
        o_ref[...] *= inv_n


def _auto_tiles():
    """(tile_n, vmem_limit_bytes) sized to the running chip's VMEM."""
    try:
        vmem = int(pltpu.get_tpu_info().vmem_capacity_bytes)
    except Exception:
        vmem = 64 * 1024 * 1024                     # conservative fallback
    if vmem >= 100 * 1024 * 1024:                   # v5e / v6e: 128 MiB VMEM
        return 4096, 64 * 1024 * 1024               # 16 MiB f32 tile (x2 bufs)
    return 2048, 32 * 1024 * 1024                   # v7x: 64 MiB physical VMEM


def entropic_loss(x: jax.Array, a: float = 1.0, *, tile_m: int = 1024,
                  tile_n: int | None = None,
                  vmem_limit_bytes: int | None = None) -> jax.Array:
    """Pallas implementation of EntropicLoss(a).forward(x). x: (N, *) -> (*)."""
    if not a > 0:
        raise ValueError("Risk aversion coefficient should be positive.")
    a = float(a)

    orig_dtype = x.dtype
    n = x.shape[0]
    rest = x.shape[1:]
    m = int(math.prod(rest))

    if n == 0 or m == 0:                            # degenerate shapes
        return jnp.mean(jnp.exp(-a * x.astype(jnp.float32)),
                        axis=0).astype(orig_dtype)

    if tile_n is None or vmem_limit_bytes is None:
        auto_n, auto_vmem = _auto_tiles()
        tile_n = auto_n if tile_n is None else tile_n
        vmem_limit_bytes = auto_vmem if vmem_limit_bytes is None else vmem_limit_bytes

    x2 = x.reshape(n, m)                            # free metadata reshape

    # Fold consecutive PnL samples into the lane axis for lane-dense tiles.
    # Only exact divisors of N are used so the reshape is pure metadata (no
    # wrapper-side slice / HBM copy).
    fold_max = min(max(1, tile_m // max(m, 1)), n)
    fold = 1
    for f in range(fold_max, 0, -1):
        if n % f == 0:
            fold = f
            break
    # TODO(synk): for awkward N (e.g. prime) with tiny m this leaves narrow
    # lane tiles; an in-kernel flat-index tail would widen them without the
    # HBM copy a wrapper-side slice would cost.

    n_rows = n // fold
    width = fold * m
    x_main = x2.reshape(n_rows, width)              # still a free reshape

    tile_w = min(tile_m, width)
    tile_r = min(tile_n, n_rows)
    if tile_r < tile_n and width > tile_w:
        # Shallow row tile: widen the lane tile so each DMA stays large
        # (same VMEM budget ~ tile_n * tile_m elements per buffer).
        grow = (tile_n * tile_m) // max(tile_r, 1)
        tile_w = min(width, max(tile_w, (grow // 128) * 128))

    w_tiles = pl.cdiv(width, tile_w)
    r_blocks = pl.cdiv(n_rows, tile_r)

    # Split the reduction over 2 grid slots only when the lane axis alone
    # cannot feed both TensorCores (v7x).  On single-TC chips the extra axis
    # is ~free: any dead step is compute-gated and its DMA deduplicated.
    n_cores = 2 if (w_tiles < 2 and r_blocks >= 2) else 1
    kt = pl.cdiv(r_blocks, n_cores)

    needs_mask = (r_blocks * tile_r != n_rows) or (n_cores * kt != r_blocks)

    kernel = functools.partial(
        _entropic_sum_kernel, a=a, inv_n=1.0 / n, tile_rows=tile_r, kt=kt,
        n_rows=n_rows, needs_mask=needs_mask)

    def in_map(c, j, k):
        # Clamp to a valid block; a fully-out-of-range step then repeats the
        # previous block index (DMA skipped) and its compute is pl.when-gated.
        return (jnp.minimum(c * kt + k, r_blocks - 1), j)

    partial = pl.pallas_call(
        kernel,
        out_shape=jax.ShapeDtypeStruct((n_cores, 1, width), jnp.float32),
        grid_spec=pltpu.PrefetchScalarGridSpec(
            num_scalar_prefetch=0,
            grid=(n_cores, w_tiles, kt),
            in_specs=[pl.BlockSpec((tile_r, tile_w), in_map)],
            out_specs=pl.BlockSpec((1, 1, tile_w), lambda c, j, k: (c, 0, j)),
        ),
        compiler_params=pltpu.CompilerParams(
            dimension_semantics=("parallel", "parallel", "arbitrary"),
            vmem_limit_bytes=vmem_limit_bytes,
        ),
    )(x_main)

    # Tiny epilogue: combine core partials and fold groups (already / n).
    loss = partial.sum(axis=0)[0].reshape(fold, m).sum(axis=0)
    return loss.reshape(rest).astype(orig_dtype)


def entropic_loss_ref(x: jax.Array, a: float = 1.0) -> jax.Array:
    """Pure-JAX reference matching the PyTorch forward."""
    return jnp.mean(jnp.exp(-a * x.astype(jnp.float32)), axis=0).astype(x.dtype)


# TODO(synk): HedgeLoss.cash (bisection / -log(-E[u])/a) is not part of
# forward() and is left to the caller.

if __name__ == "__main__":
    key = jax.random.PRNGKey(0)

    # Profit-and-loss distribution: N=8 samples, extra dims (4, 16).
    x = jax.random.normal(key, (8, 4, 16), dtype=jnp.float32)
    a = 1.0
    loss = jax.block_until_ready(entropic_loss(x, a=a))
    ref = entropic_loss_ref(x, a=a)
    assert loss.shape == x.shape[1:], (loss.shape, x.shape[1:])
    assert jnp.allclose(loss, ref, rtol=1e-5, atol=1e-5), (loss, ref)

    # Docstring sanity check: pnl = -arange(4.0) -> loss ~= 7.7982 (scalar).
    pnl = -jnp.arange(4.0)
    doc_loss = jax.block_until_ready(entropic_loss(pnl, a=1.0))
    assert doc_loss.shape == ()
    assert jnp.allclose(doc_loss, 7.7982, atol=1e-3), doc_loss

    # Ragged reduction tiles + 2-way split + dead step (small tile override).
    x_m = jax.random.normal(jax.random.PRNGKey(1), (37, 10), dtype=jnp.float32)
    l_m = jax.block_until_ready(entropic_loss(x_m, a=0.5, tile_m=16, tile_n=8))
    assert jnp.allclose(l_m, entropic_loss_ref(x_m, a=0.5), rtol=1e-5, atol=1e-5)

    # Prime N with m=1: divisor-only folding (no wrapper slice/copy).
    x_p = jax.random.normal(jax.random.PRNGKey(2), (2003,), dtype=jnp.float32)
    l_p = jax.block_until_ready(entropic_loss(x_p, a=1.0))
    assert jnp.allclose(l_p, entropic_loss_ref(x_p, a=1.0), rtol=1e-5, atol=1e-5)

    # Ragged lane tiles (partial output writes) with small tile override.
    x_w = jax.random.normal(jax.random.PRNGKey(4), (32, 200), dtype=jnp.float32)
    l_w = jax.block_until_ready(entropic_loss(x_w, a=1.0, tile_m=128, tile_n=32))
    assert jnp.allclose(l_w, entropic_loss_ref(x_w, a=1.0), rtol=1e-5, atol=1e-5)

    # bf16 feed-through (streamed bf16, upcast to f32 only inside the kernel).
    x_b = jax.random.normal(jax.random.PRNGKey(3), (16, 4, 16)).astype(jnp.bfloat16)
    l_b = jax.block_until_ready(entropic_loss(x_b, a=1.0))
    assert l_b.dtype == jnp.bfloat16
    assert jnp.allclose(l_b.astype(jnp.float32),
                        entropic_loss_ref(x_b, a=1.0).astype(jnp.float32),
                        rtol=2e-2, atol=2e-2)

    print("KERNEL_OK")
</pallas_src>

<mosaic_0001>
module attributes {stable_mosaic.version = 11 : i64} {
  func.func @_entropic_sum_kernel(%arg0: i32, %arg1: i32, %arg2: i32, %arg3: memref<1x512xf32, #tpu.memory_space<vmem>>, %arg4: memref<1x1x512xf32, #tpu.memory_space<vmem>>) attributes {dimension_semantics = [#tpu.dimension_semantics<parallel>, #tpu.dimension_semantics<parallel>, #tpu.dimension_semantics<arbitrary>], iteration_bounds = array<i64: 1, 1, 1>, scalar_prefetch = 0 : i64, scratch_operands = 0 : i64, tpu.core_type = #tpu.core_type<tc>, window_params = [{transform_indices = @transform_0, window_bounds = array<i64: 1, 512>}, {transform_indices = @transform_1, window_bounds = array<i64: 1, 1, 512>}]} {
    %c0_i32 = arith.constant 0 : i32
    %0 = arith.cmpi eq, %arg2, %c0_i32 : i32
    %1 = arith.extui %0 : i1 to i32
    %c0_i32_0 = arith.constant 0 : i32
    %2 = arith.cmpi ne, %1, %c0_i32_0 : i32
    scf.if %2 {
      %cst_11 = arith.constant 0.000000e+00 : f32
      %15 = vector.broadcast %cst_11 : f32 to vector<1x1x512xf32>
      %c0_12 = arith.constant 0 : index
      %c0_13 = arith.constant 0 : index
      %c0_14 = arith.constant 0 : index
      %16 = vector.load %arg4[%c0_12, %c0_13, %c0_14] : memref<1x1x512xf32, #tpu.memory_space<vmem>>, vector<1x1x512xf32>
      tpu.vector_store %arg4[%c0_12, %c0_13, %c0_14], %15 {strides = array<i32>} : memref<1x1x512xf32, #tpu.memory_space<vmem>>, vector<1x1x512xf32>,
    } else {
    }
    %c0 = arith.constant 0 : index
    %c0_1 = arith.constant 0 : index
    %3 = vector.load %arg3[%c0, %c0_1] : memref<1x512xf32, #tpu.memory_space<vmem>>, vector<1x512xf32>
    %cst = arith.constant -1.000000e+00 : f32
    %4 = vector.broadcast %cst : f32 to vector<1x512xf32>
    %5 = arith.mulf %3, %4 : vector<1x512xf32>
    %6 = math.exp %5 : vector<1x512xf32>
    %c0_2 = arith.constant 0 : index
    %c0_3 = arith.constant 0 : index
    %c0_4 = arith.constant 0 : index
    %7 = vector.load %arg4[%c0_2, %c0_3, %c0_4] : memref<1x1x512xf32, #tpu.memory_space<vmem>>, vector<1x1x512xf32>
    %cst_5 = arith.constant dense<0.000000e+00> : vector<512xf32>
    %8 = vector.multi_reduction <add>, %6, %cst_5 [0] : vector<1x512xf32> to vector<512xf32>
    %9 = vector.shape_cast %8 : vector<512xf32> to vector<1x1x512xf32>
    %10 = arith.addf %7, %9 : vector<1x1x512xf32>
    %c0_6 = arith.constant 0 : index
    %c0_7 = arith.constant 0 : index
    %c0_8 = arith.constant 0 : index
    %11 = vector.load %arg4[%c0_6, %c0_7, %c0_8] : memref<1x1x512xf32, #tpu.memory_space<vmem>>, vector<1x1x512xf32>
    tpu.vector_store %arg4[%c0_6, %c0_7, %c0_8], %10 {strides = array<i32>} : memref<1x1x512xf32, #tpu.memory_space<vmem>>, vector<1x1x512xf32>,
    %c0_i32_9 = arith.constant 0 : i32
    %12 = arith.cmpi eq, %arg2, %c0_i32_9 : i32
    %13 = arith.extui %12 : i1 to i32
    %c0_i32_10 = arith.constant 0 : i32
    %14 = arith.cmpi ne, %13, %c0_i32_10 : i32
    scf.if %14 {
      %c0_11 = arith.constant 0 : index
      %c0_12 = arith.constant 0 : index
      %c0_13 = arith.constant 0 : index
      %15 = vector.load %arg4[%c0_11, %c0_12, %c0_13] : memref<1x1x512xf32, #tpu.memory_space<vmem>>, vector<1x1x512xf32>
      %cst_14 = arith.constant 1.250000e-01 : f32
      %16 = vector.broadcast %cst_14 : f32 to vector<1x1x512xf32>
      %17 = arith.mulf %15, %16 : vector<1x1x512xf32>
      %c0_15 = arith.constant 0 : index
      %c0_16 = arith.constant 0 : index
      %c0_17 = arith.constant 0 : index
      %18 = vector.load %arg4[%c0_15, %c0_16, %c0_17] : memref<1x1x512xf32, #tpu.memory_space<vmem>>, vector<1x1x512xf32>
      tpu.vector_store %arg4[%c0_15, %c0_16, %c0_17], %17 {strides = array<i32>} : memref<1x1x512xf32, #tpu.memory_space<vmem>>, vector<1x1x512xf32>,
    } else {
    }
    return
  }
  func.func @transform_0(%arg0: i32, %arg1: i32, %arg2: i32) -> (i32, i32) {
    %c1_i32 = arith.constant 1 : i32
    %0 = arith.muli %arg0, %c1_i32 : i32
    %1 = arith.addi %0, %arg2 : i32
    %c0_i32 = arith.constant 0 : i32
    %2 = arith.minsi %1, %c0_i32 : i32
    %c0_i32_0 = arith.constant 0 : i32
    return %2, %arg1 : i32, i32
  }
  func.func @transform_1(%arg0: i32, %arg1: i32, %arg2: i32) -> (i32, i32, i32) {
    %c0_i32 = arith.constant 0 : i32
    %c0_i32_0 = arith.constant 0 : i32
    return %arg0, %c0_i32, %arg1 : i32, i32, i32
  }
}

</mosaic_0001>

<bundles_post_ra>
// kernel: tpu_custom_call.1
= control target key start
LH: loop header
LB: loop body
LE: loop exit
PB: predicated region body
PF: predicated region fallthrough
CT: control target
= control target key end

     0   :  { %6 = vsyncpa [#allocation3], 0  ;;  %s174_s0 = inlined_call_operand.hbm [shape: f32[1,512], index: 0, kind: input, shape index: {}]   ;;  %s175_s1 = inlined_call_operand.hbm [shape: f32[1,1,512], index: 1, kind: output, shape index: {}]  }
   0x1   :  { %7 = vsyncpa [#allocation4], 0  ;;  %s127_s6 = smov [#allocation2]   ;;  %s79_s10 = scalar_lea.hbm %s174_s0, 64 }
   0x2   :  { %s20_s7 = sshll.u32 %s127_s6, 4  ;;  %p80_p0 = scmp.ne.s32.totalorder %s174_s0, %s79_s10  ;;  %s21_s7 = int_to_ptr.vmem [resolvable:$true] %s20_s7 }
   0x3   :  { %p83_p1 = scmp.lt.u32.totalorder %s79_s10, %s174_s0 }
   0x5   :  { %p85_p2 = pnand %p83_p1, %p80_p0 }
   0x7   :  { %88 = shalt.err (!%p85_p2)
}
   0x8   :  { %s89_s15 = scalar_lea.vmem %s21_s7, 64  ;;  %p94_p4 = scmp.lt.s32.totalorder %s21_s7, %s21_s7 }
   0x9   :  { %p90_p3 = scmp.ne.s32.totalorder %s21_s7, %s89_s15  ;;  %p95_p5 = scmp.lt.s32.totalorder %s89_s15, %s89_s15 }
   0xb   :  { %p96_p6 = por %p95_p5, %p94_p4 }
   0xd   :  { %p97_p7 = pnand %p96_p6, %p90_p3 }
   0xf   :  { %100 = shalt.err (!%p97_p7)
}
  0x10   :  { %23 = dma.hbm_to_vmem [thread:$0]  %s174_s0, 64, %s21_s7, [#allocation3]  }
  0x11   :  { %123 = dma.done.wait [#allocation3], 64  }
  0x12   :  { %124 = vsyncadd [#allocation3], 4294967232  ;;  %v34_v0 = vlaneseq  ;;  %v128_v2 = vmov 0.0   ;;  %v39_v3 = vld [vmem:[#allocation2] sm:$0xf]  ;;  %s129_s0 = smov [#allocation5]  }
  0x13   :  { %v40_v4 = vmul.f32 -1.0, %v39_v3  ;;  %s63_s18 = sshll.u32 %s129_s0, 4  ;;  %s64_s18 = int_to_ptr.vmem [resolvable:$true] %s63_s18 }
  0x14   :  { %vm152_vm0 = vcmp.lt.s32.totalorder %v34_v0, 512  ;;  %s101_s19 = scalar_lea.vmem %s64_s18, 64  ;;  %p106_p9 = scmp.lt.s32.totalorder %s64_s18, %s64_s18 }
  0x15   :  { %38 = vst.msk [vmem:[#allocation5] sm:$0xf] %vm152_vm0, %v128_v2  ;;  %v41_v5 = vmul.f32 1.442695, %v40_v4  ;;  %p102_p8 = scmp.ne.s32.totalorder %s64_s18, %s101_s19  ;;  %p107_p10 = scmp.lt.s32.totalorder %s101_s19, %s101_s19 }
  0x17   :  { %77 = vpow2.f32 %v41_v5  ;;  %p108_p11 = por %p107_p10, %p106_p9 }
  0x19   :  { %p109_p12 = pnand %p108_p11, %p102_p8 }
  0x1c   :  { %v43_v6 = vld [vmem:[#allocation5] sm:$0xf] }
  0x21   :  { %v78_v7 = vpop.eup %77 }
  0x22   :  { %v45_v8 = vadd.f32 %v78_v7, %v43_v6 }
  0x24   :  { %50 = vst.msk [vmem:[#allocation5] sm:$0xf] %vm152_vm0, %v45_v8 }
  0x2b   :  { %v54_v9 = vld [vmem:[#allocation5] sm:$0xf] }
  0x2c   :  { %v55_v10 = vmul.f32 0.125, %v54_v9 }
  0x2e   :  { %56 = vst.msk [vmem:[#allocation5] sm:$0xf] %vm152_vm0, %v55_v10 }
  0x2f   :  { %112 = shalt.err (!%p109_p12)
}
  0x30   :  { %s113_s22 = scalar_lea.hbm %s175_s1, 64 }
  0x31   :  { %p114_p13 = scmp.ne.s32.totalorder %s175_s1, %s113_s22  ;;  %p117_p0 = scmp.lt.u32.totalorder %s113_s22, %s175_s1 }
  0x33   :  { %p119_p1 = pnand %p117_p0, %p114_p13 }
  0x35   :  { %122 = shalt.err (!%p119_p1)
}
  0x36   :  { %66 = dma.vmem_to_hbm [thread:$0]  %s64_s18, 64, %s175_s1, [#allocation4]  }
  0x37   :  { %125 = dma.done.wait [#allocation4], 64  }
  0x38   :  { %126 = vsyncadd [#allocation4], 4294967232 }
  0x39   :  { %70 = vsyncpa [#allocation3], 1 }
  0x3a   :  { %71 = vsyncpa [#allocation4], 1 }

</bundles_post_ra>
